<compile_context>
chip_gen: v7x
topology: tpu7x:2x2x1
jax: 0.10.0
libtpu: 0.0.40
codegen_flags: <defaults>
</compile_context>

<pallas_src>
import math
import numpy as np
import jax
import jax.numpy as jnp
from jax import lax
from jax.experimental import pallas as pl
from jax.experimental.pallas import tpu as pltpu

C = 128                               # fixed by the module: Conv1d(128,1,1), SwitchNorm1d(128)
_F32_TILE_BUDGET = 4 * 1024 * 1024    # target per-step f32 working-tile bytes
_VMEM_LIMIT = 32 * 1024 * 1024        # raise v5e's 16 MiB scoped default; <= physical on all gens


def _make_kernel(eps: float):
    inv_sqrt2 = 1.0 / math.sqrt(2.0)
    inv_cm1 = 1.0 / (C - 1)

    def kernel(x_ref, wcol_ref, p_ref, o_ref):
        # x_ref:    (TB, L, C)  float32/bfloat16 input tile (upcast in-kernel)
        # wcol_ref: (C, 128)    MXU rhs; column 0 = conv weight, rest zeros (resident)
        # p_ref:    (8, C)      packed params (resident):
        #   row0 sn weight | row1 sn bias | row2 mw1*running_mean | row3 vw1*running_var
        #   row4 mw0 (bcast) | row5 vw0 (bcast)
        # o_ref:    (TB, C)     lane/sublane-dense float32 output slab
        tb, seq, c = x_ref.shape
        x = x_ref[...].astype(jnp.float32)                        # (TB, L, C)

        # --- 1x1 Conv1d logits on the MXU (was VPU mul + XLU lane-reduce) ---
        # The reshape is layout-free when L % 8 == 0.  Precision.HIGHEST keeps
        # f32 accuracy on hardware (Precision.HIGH / bf16_3x is an ample
        # fallback if the multi-pass matmul ever binds on v5e).
        # Conv bias dropped: softmax over L is shift-invariant, exactly.
        x2 = x.reshape(tb * seq, c)
        s_full = jnp.dot(x2, wcol_ref[...],
                         preferred_element_type=jnp.float32,
                         precision=lax.Precision.HIGHEST)         # (TB*L, 128)
        logits = s_full[:, 0:1].reshape(tb, seq, 1)               # (TB, L, 1)

        # --- softmax over the sequence axis (normalization folded in post-pool) ---
        m = jnp.max(logits, axis=1, keepdims=True)                # (TB, 1, 1)
        e = jnp.exp(logits - m)                                   # (TB, L, 1)
        denom = jnp.sum(e, axis=1, keepdims=True)                 # (TB, 1, 1)
        inv_denom = (1.0 / denom).reshape(tb, 1)                  # exact; tiny array

        # --- attention pooling: single lane-broadcast of e, sublane reduce over L ---
        y = jnp.sum(e * x, axis=1) * inv_denom                    # (TB, C)

        # --- exact (erf-based) GELU, PyTorch nn.GELU default ---
        y = 0.5 * y * (1.0 + lax.erf(y * inv_sqrt2))

        # --- SwitchNorm1d, eval mode (running-stat branch) ---
        mean_ln = jnp.mean(y, axis=1, keepdims=True)              # (TB, 1)
        d = y - mean_ln
        var_ln = jnp.sum(d * d, axis=1, keepdims=True) * inv_cm1  # unbiased (ddof=1)
        mean = p_ref[4:5, 0:1] * mean_ln + p_ref[2:3, :]          # (TB, C)
        var = p_ref[5:6, 0:1] * var_ln + p_ref[3:4, :]            # (TB, C)
        out = (y - mean) * lax.rsqrt(var + eps)
        out = out * p_ref[0:1, :] + p_ref[1:2, :]
        o_ref[...] = out.astype(o_ref.dtype)

    return kernel


def _choose_block_b(B, L, block_b=None):
    if block_b is None:
        row_bytes = L * C * 4                         # f32 working set per example
        block_b = max(8, (_F32_TILE_BUDGET // row_bytes) // 8 * 8)
        if B > 8:
            # v7x has two TensorCores: keep >= 2 grid steps when the batch allows
            half = ((B + 1) // 2 + 7) // 8 * 8
            block_b = min(block_b, max(8, half))
    if block_b >= B:
        return B                  # single block covering the whole array (any B is legal)
    if block_b % 8 != 0:
        raise ValueError("block_b must be a multiple of 8 when it splits the batch")
    return block_b


def attention_pooling(x, conv_w, conv_b, sn_w, sn_b, mean_weight, var_weight,
                      running_mean, running_var, eps=1e-3, block_b=None):
    """x: (B, L, 128) float32/bfloat16 -> (B, 128) float32 (eval-mode forward).

    bfloat16 inputs pass straight through (upcast in-kernel), halving the
    dominant HBM read traffic of this memory-bound kernel.
    """
    B, L, Cx = x.shape
    assert Cx == C

    # Pack params traceably (folds into the caller's jit; no host round-trips).
    w = jnp.asarray(conv_w, jnp.float32).reshape(C)
    wcol = jnp.zeros((C, 128), jnp.float32).at[:, 0].set(w)    # MXU rhs tile
    mw = jax.nn.softmax(jnp.asarray(mean_weight, jnp.float32))
    vw = jax.nn.softmax(jnp.asarray(var_weight, jnp.float32))
    p = jnp.zeros((8, C), jnp.float32)
    p = p.at[0].set(jnp.asarray(sn_w, jnp.float32).reshape(C))
    p = p.at[1].set(jnp.asarray(sn_b, jnp.float32).reshape(C))
    p = p.at[2].set(mw[1] * jnp.asarray(running_mean, jnp.float32).reshape(C))
    p = p.at[3].set(vw[1] * jnp.asarray(running_var, jnp.float32).reshape(C))
    p = p.at[4].set(mw[0])
    p = p.at[5].set(vw[0])
    # conv_b intentionally unused: softmax over L is shift-invariant (exact).

    TB = _choose_block_b(B, L, block_b)
    n_blocks = pl.cdiv(B, TB)   # ragged last block handled by Pallas (no jnp.pad)

    return pl.pallas_call(
        _make_kernel(float(eps)),
        out_shape=jax.ShapeDtypeStruct((B, C), jnp.float32),
        grid=(n_blocks,),
        in_specs=[
            pl.BlockSpec((TB, L, C), lambda b: (b, 0, 0)),
            pl.BlockSpec((C, 128), lambda b: (0, 0)),      # resident across the grid
            pl.BlockSpec((8, C), lambda b: (0, 0)),        # resident across the grid
        ],
        out_specs=pl.BlockSpec((TB, C), lambda b: (b, 0)),
        compiler_params=pltpu.CompilerParams(
            dimension_semantics=("parallel",),
            vmem_limit_bytes=_VMEM_LIMIT),
    )(x, wcol, p)


def reference(x, conv_w, conv_b, sn_w, sn_b, mean_weight, var_weight,
              running_mean, running_var, eps=1e-3):
    """Pure-JAX reference of the PyTorch forward (eval mode)."""
    x = x.astype(jnp.float32)
    logits = jnp.einsum('blc,c->bl', x, conv_w) + conv_b
    a = jax.nn.softmax(logits, axis=-1)
    y = jnp.einsum('bl,blc->bc', a, x)
    y = 0.5 * y * (1.0 + lax.erf(y / np.sqrt(2.0)))
    mw = jax.nn.softmax(jnp.asarray(mean_weight, jnp.float32))
    vw = jax.nn.softmax(jnp.asarray(var_weight, jnp.float32))
    mean_ln = y.mean(axis=1, keepdims=True)
    var_ln = y.var(axis=1, keepdims=True, ddof=1)
    mean = mw[0] * mean_ln + mw[1] * running_mean.reshape(1, C)
    var = vw[0] * var_ln + vw[1] * running_var.reshape(1, C)
    return (y - mean) / jnp.sqrt(var + eps) * sn_w.reshape(1, C) + sn_b.reshape(1, C)


if __name__ == "__main__":
    key = jax.random.PRNGKey(0)
    kx1, kx2, kx3, kw, kb, ksw, ksb, krm, krv = jax.random.split(key, 9)

    L = 16
    conv_w = jax.random.normal(kw, (C,), jnp.float32) * 0.1     # Conv1d(128,1,1).weight
    conv_b = jax.random.normal(kb, (), jnp.float32) * 0.1       # Conv1d bias
    sn_w = 1.0 + 0.2 * jax.random.normal(ksw, (C,), jnp.float32)
    sn_b = 0.1 * jax.random.normal(ksb, (C,), jnp.float32)
    mean_weight = jnp.array([0.3, -0.2], jnp.float32)
    var_weight = jnp.array([0.1, 0.4], jnp.float32)
    running_mean = 0.1 * jax.random.normal(krm, (C,), jnp.float32)
    running_var = 0.5 + jax.random.uniform(krv, (C,), jnp.float32)
    eps = 1e-3

    fwd = jax.jit(attention_pooling, static_argnames=("eps", "block_b"))
    args = (conv_w, conv_b, sn_w, sn_b, mean_weight, var_weight,
            running_mean, running_var)

    # case 1: tiny batch -> one full-array block
    x1 = jax.random.normal(kx1, (2, L, C), dtype=jnp.float32)
    out1 = jax.block_until_ready(fwd(x1, *args, eps=eps))
    ref1 = jax.block_until_ready(reference(x1, *args, eps=eps))
    np.testing.assert_allclose(np.asarray(out1), np.asarray(ref1), rtol=1e-3, atol=1e-3)

    # case 2: batch not a multiple of the block -> ragged last block, no host padding
    x2 = jax.random.normal(kx2, (20, L, C), dtype=jnp.float32)
    out2 = jax.block_until_ready(fwd(x2, *args, eps=eps, block_b=8))
    ref2 = jax.block_until_ready(reference(x2, *args, eps=eps))
    np.testing.assert_allclose(np.asarray(out2), np.asarray(ref2), rtol=1e-3, atol=1e-3)

    # case 3: bfloat16 input passthrough (upcast in-kernel), default block heuristic
    x3 = jax.random.normal(kx3, (64, L, C), dtype=jnp.float32).astype(jnp.bfloat16)
    out3 = jax.block_until_ready(fwd(x3, *args, eps=eps))
    ref3 = jax.block_until_ready(reference(x3, *args, eps=eps))
    np.testing.assert_allclose(np.asarray(out3), np.asarray(ref3), rtol=1e-3, atol=1e-3)

    print("KERNEL_OK")
</pallas_src>

<mosaic_0001>
module attributes {stable_mosaic.version = 11 : i64} {
  func.func @kernel(%arg0: i32, %arg1: memref<2x16x128xf32, #tpu.memory_space<vmem>>, %arg2: memref<128x128xf32, #tpu.memory_space<vmem>>, %arg3: memref<8x128xf32, #tpu.memory_space<vmem>>, %arg4: memref<2x128xf32, #tpu.memory_space<vmem>>) attributes {dimension_semantics = [#tpu.dimension_semantics<parallel>], iteration_bounds = array<i64: 1>, scalar_prefetch = 0 : i64, scratch_operands = 0 : i64, tpu.core_type = #tpu.core_type<tc>, window_params = [{transform_indices = @transform_0, window_bounds = array<i64: 2, 16, 128>}, {pipeline_mode = #tpu.pipeline_mode<synchronous>, transform_indices = @transform_1, window_bounds = array<i64: 128, 128>}, {pipeline_mode = #tpu.pipeline_mode<synchronous>, transform_indices = @transform_2, window_bounds = array<i64: 8, 128>}, {transform_indices = @transform_3, window_bounds = array<i64: 2, 128>}]} {
    %c0 = arith.constant 0 : index
    %c0_0 = arith.constant 0 : index
    %c0_1 = arith.constant 0 : index
    %0 = vector.load %arg1[%c0, %c0_0, %c0_1] : memref<2x16x128xf32, #tpu.memory_space<vmem>>, vector<2x16x128xf32>
    %1 = vector.shape_cast %0 : vector<2x16x128xf32> to vector<32x128xf32>
    %c0_2 = arith.constant 0 : index
    %c0_3 = arith.constant 0 : index
    %2 = vector.load %arg2[%c0_2, %c0_3] : memref<128x128xf32, #tpu.memory_space<vmem>>, vector<128x128xf32>
    %cst = arith.constant dense<0.000000e+00> : vector<32x128xf32>
    %3 = tpu.matmul %1, %2, %cst {dimension_numbers = #tpu.dot_dimension_numbers<[1], [0], [0], [1], [0, 0, 1, 1], [], []>, precision = #tpu.contract_precision<fp32>} : vector<32x128xf32>, vector<128x128xf32>, vector<32x128xf32> -> vector<32x128xf32>
    %4 = vector.extract_strided_slice %3 {offsets = [0, 0], sizes = [32, 1], strides = [1, 1]} : vector<32x128xf32> to vector<32x1xf32>
    %5 = vector.shape_cast %4 : vector<32x1xf32> to vector<2x16x1xf32>
    %cst_4 = arith.constant dense<0xFF800000> : vector<2x1xf32>
    %6 = vector.multi_reduction <maximumf>, %5, %cst_4 [1] : vector<2x16x1xf32> to vector<2x1xf32>
    %7 = vector.shape_cast %6 : vector<2x1xf32> to vector<2x1x1xf32>
    %8 = vector.broadcast %7 : vector<2x1x1xf32> to vector<2x16x1xf32>
    %9 = arith.subf %5, %8 : vector<2x16x1xf32>
    %10 = math.exp %9 : vector<2x16x1xf32>
    %cst_5 = arith.constant dense<0.000000e+00> : vector<2x1xf32>
    %11 = vector.multi_reduction <add>, %10, %cst_5 [1] : vector<2x16x1xf32> to vector<2x1xf32>
    %12 = vector.shape_cast %11 : vector<2x1xf32> to vector<2x1x1xf32>
    %cst_6 = arith.constant 1.000000e+00 : f32
    %13 = vector.broadcast %cst_6 : f32 to vector<2x1x1xf32>
    %14 = arith.divf %13, %12 : vector<2x1x1xf32>
    %15 = vector.shape_cast %14 : vector<2x1x1xf32> to vector<2x1xf32>
    %16 = vector.broadcast %10 : vector<2x16x1xf32> to vector<2x16x128xf32>
    %17 = arith.mulf %16, %0 : vector<2x16x128xf32>
    %cst_7 = arith.constant dense<0.000000e+00> : vector<2x128xf32>
    %18 = vector.multi_reduction <add>, %17, %cst_7 [1] : vector<2x16x128xf32> to vector<2x128xf32>
    %19 = vector.broadcast %15 : vector<2x1xf32> to vector<2x128xf32>
    %20 = arith.mulf %18, %19 : vector<2x128xf32>
    %cst_8 = arith.constant 5.000000e-01 : f32
    %21 = vector.broadcast %cst_8 : f32 to vector<2x128xf32>
    %22 = arith.mulf %21, %20 : vector<2x128xf32>
    %cst_9 = arith.constant 0.707106769 : f32
    %23 = vector.broadcast %cst_9 : f32 to vector<2x128xf32>
    %24 = arith.mulf %20, %23 : vector<2x128xf32>
    %25 = math.erf %24 : vector<2x128xf32>
    %cst_10 = arith.constant 1.000000e+00 : f32
    %26 = vector.broadcast %cst_10 : f32 to vector<2x128xf32>
    %27 = arith.addf %26, %25 : vector<2x128xf32>
    %28 = arith.mulf %22, %27 : vector<2x128xf32>
    %cst_11 = arith.constant dense<0.000000e+00> : vector<2xf32>
    %29 = vector.multi_reduction <add>, %28, %cst_11 [1] : vector<2x128xf32> to vector<2xf32>
    %30 = vector.shape_cast %29 : vector<2xf32> to vector<2x1xf32>
    %cst_12 = arith.constant 1.280000e+02 : f32
    %31 = vector.broadcast %cst_12 : f32 to vector<2x1xf32>
    %32 = arith.divf %30, %31 : vector<2x1xf32>
    %33 = vector.broadcast %32 : vector<2x1xf32> to vector<2x128xf32>
    %34 = arith.subf %28, %33 : vector<2x128xf32>
    %35 = arith.mulf %34, %34 : vector<2x128xf32>
    %cst_13 = arith.constant dense<0.000000e+00> : vector<2xf32>
    %36 = vector.multi_reduction <add>, %35, %cst_13 [1] : vector<2x128xf32> to vector<2xf32>
    %37 = vector.shape_cast %36 : vector<2xf32> to vector<2x1xf32>
    %cst_14 = arith.constant 0.00787401571 : f32
    %38 = vector.broadcast %cst_14 : f32 to vector<2x1xf32>
    %39 = arith.mulf %37, %38 : vector<2x1xf32>
    %c4 = arith.constant 4 : index
    %c0_15 = arith.constant 0 : index
    %40 = vector.load %arg3[%c4, %c0_15] : memref<8x128xf32, #tpu.memory_space<vmem>>, vector<1x1xf32>
    %41 = vector.broadcast %40 : vector<1x1xf32> to vector<2x1xf32>
    %42 = arith.mulf %41, %32 : vector<2x1xf32>
    %c2 = arith.constant 2 : index
    %c0_16 = arith.constant 0 : index
    %43 = vector.load %arg3[%c2, %c0_16] : memref<8x128xf32, #tpu.memory_space<vmem>>, vector<1x128xf32>
    %44 = vector.broadcast %42 : vector<2x1xf32> to vector<2x128xf32>
    %45 = vector.broadcast %43 : vector<1x128xf32> to vector<2x128xf32>
    %46 = arith.addf %44, %45 : vector<2x128xf32>
    %c5 = arith.constant 5 : index
    %c0_17 = arith.constant 0 : index
    %47 = vector.load %arg3[%c5, %c0_17] : memref<8x128xf32, #tpu.memory_space<vmem>>, vector<1x1xf32>
    %48 = vector.broadcast %47 : vector<1x1xf32> to vector<2x1xf32>
    %49 = arith.mulf %48, %39 : vector<2x1xf32>
    %c3 = arith.constant 3 : index
    %c0_18 = arith.constant 0 : index
    %50 = vector.load %arg3[%c3, %c0_18] : memref<8x128xf32, #tpu.memory_space<vmem>>, vector<1x128xf32>
    %51 = vector.broadcast %49 : vector<2x1xf32> to vector<2x128xf32>
    %52 = vector.broadcast %50 : vector<1x128xf32> to vector<2x128xf32>
    %53 = arith.addf %51, %52 : vector<2x128xf32>
    %54 = arith.subf %28, %46 : vector<2x128xf32>
    %cst_19 = arith.constant 1.000000e-03 : f32
    %55 = vector.broadcast %cst_19 : f32 to vector<2x128xf32>
    %56 = arith.addf %53, %55 : vector<2x128xf32>
    %57 = math.rsqrt %56 : vector<2x128xf32>
    %58 = arith.mulf %54, %57 : vector<2x128xf32>
    %c0_20 = arith.constant 0 : index
    %c0_21 = arith.constant 0 : index
    %59 = vector.load %arg3[%c0_20, %c0_21] : memref<8x128xf32, #tpu.memory_space<vmem>>, vector<1x128xf32>
    %60 = vector.broadcast %59 : vector<1x128xf32> to vector<2x128xf32>
    %61 = arith.mulf %58, %60 : vector<2x128xf32>
    %c1 = arith.constant 1 : index
    %c0_22 = arith.constant 0 : index
    %62 = vector.load %arg3[%c1, %c0_22] : memref<8x128xf32, #tpu.memory_space<vmem>>, vector<1x128xf32>
    %63 = vector.broadcast %62 : vector<1x128xf32> to vector<2x128xf32>
    %64 = arith.addf %61, %63 : vector<2x128xf32>
    %c0_23 = arith.constant 0 : index
    %c0_24 = arith.constant 0 : index
    %65 = vector.load %arg4[%c0_23, %c0_24] : memref<2x128xf32, #tpu.memory_space<vmem>>, vector<2x128xf32>
    tpu.vector_store %arg4[%c0_23, %c0_24], %64 {strides = array<i32>} : memref<2x128xf32, #tpu.memory_space<vmem>>, vector<2x128xf32>,
    return
  }
  func.func @transform_0(%arg0: i32) -> (i32, i32, i32) {
    %c0_i32 = arith.constant 0 : i32
    %c0_i32_0 = arith.constant 0 : i32
    %c0_i32_1 = arith.constant 0 : i32
    return %arg0, %c0_i32, %c0_i32_0 : i32, i32, i32
  }
  func.func @transform_1(%arg0: i32) -> (i32, i32) {
    %c0_i32 = arith.constant 0 : i32
    %c0_i32_0 = arith.constant 0 : i32
    %c0_i32_1 = arith.constant 0 : i32
    return %c0_i32, %c0_i32_0 : i32, i32
  }
  func.func @transform_2(%arg0: i32) -> (i32, i32) {
    %c0_i32 = arith.constant 0 : i32
    %c0_i32_0 = arith.constant 0 : i32
    %c0_i32_1 = arith.constant 0 : i32
    return %c0_i32, %c0_i32_0 : i32, i32
  }
  func.func @transform_3(%arg0: i32) -> (i32, i32) {
    %c0_i32 = arith.constant 0 : i32
    %c0_i32_0 = arith.constant 0 : i32
    return %arg0, %c0_i32 : i32, i32
  }
}

</mosaic_0001>

<bundles_post_ra>
// kernel: attention_pooling.1
= control target key start
LH: loop header
LB: loop body
LE: loop exit
PB: predicated region body
PF: predicated region fallthrough
CT: control target
= control target key end

     0   :  { %s2067_s0 = inlined_call_operand.vmem [shape: f32[2,16,128], index: 0, kind: input, shape index: {}]   ;;  %s2068_s1 = inlined_call_operand.vmem [shape: f32[128,128], index: 1, kind: input, shape index: {}]   ;;  %s2069_s2 = inlined_call_operand.vmem [shape: f32[8,128], index: 2, kind: input, shape index: {}]   ;;  %s2070_s3 = inlined_call_operand.hbm [shape: f32[2,128], index: 3, kind: output, shape index: {}]  }
   0x1   :  { %v19_v0 = vld [vmem:[%s2068_s1] sm:$0xff]  ;;  %v20_v1 = vld [vmem:[%s2068_s1 + $0x8] sm:$0xff]  ;;  %v21_v2 = vld [vmem:[%s2068_s1 + $0x10] sm:$0xff] }
   0x2   :  { %v36_v3 = vand.u32 4294901760, %v19_v0  ;;  %v39_v4 = vand.u32 4294901760, %v20_v1  ;;  %v22_v5 = vld [vmem:[%s2068_s1 + $0x18] sm:$0xff]  ;;  %v42_v6 = vand.u32 4294901760, %v21_v2  ;;  %v1677_v7 = vld [vmem:[%s2068_s1 + $0x20] sm:$0xff]  ;;  %v1682_v8 = vld [vmem:[%s2068_s1 + $0x28] sm:$0xff] }
   0x3   :  { %v45_v9 = vand.u32 4294901760, %v22_v5  ;;  %v48_v11 = vand.u32 4294901760, %v1677_v7  ;;  %v51_v12 = vand.u32 4294901760, %v1682_v8  ;;  %v1693_v14 = vld [vmem:[%s2068_s1 + $0x30] sm:$0xff]  ;;  %v1698_v15 = vld [vmem:[%s2068_s1 + $0x38] sm:$0xff]  ;;  %v1705_v16 = vld [vmem:[%s2067_s0] sm:$0xff] }
   0x4   :  { %v1684_v10 = vpack.c.bf16 %v39_v4, %v36_v3  ;;  %v1710_v17 = vand.u32 4294901760, %v1705_v16  ;;  %v54_v19 = vand.u32 4294901760, %v1693_v14  ;;  %v57_v20 = vand.u32 4294901760, %v1698_v15 }
   0x5   :  { %v1688_v13 = vpack.c.bf16 %v45_v9, %v42_v6  ;;  %v1718_v18 = vpack.c.bf16 %v51_v12, %v48_v11 }
   0x6   :  { %1383 = vmatprep.subr.bf16.mxu1 %v1684_v10  ;;  %1479 = vmatprep.subr.bf16.mxu0 %v1684_v10 }
   0x7   :  { %1385 = vmatpush3.bf16.msra.mxu1 %v1684_v10  ;;  %1481 = vmatpush3.bf16.msra.mxu0 %v1684_v10 }
   0x8   :  { %1387 = vmatprep.subr.bf16.mxu1 %v1688_v13  ;;  %1483 = vmatprep.subr.bf16.mxu0 %v1688_v13 }
   0x9   :  { %8 = vsyncpa [#allocation3], 0  ;;  %v1725_v21 = vld [vmem:[%s2068_s1 + $0x40] sm:$0xff]  ;;  %v1730_v22 = vld [vmem:[%s2068_s1 + $0x48] sm:$0xff]  ;;  %v1734_v23 = vsub.f32 %v1705_v16, %v1710_v17  ;;  %v1745_v25 = vpack.c.bf16 %v57_v20, %v54_v19  ;;  %v1787_v38 = vsub.f32 %v19_v0, %v36_v3  ;;  %v1789_v39 = vsub.f32 %v20_v1, %v39_v4  ;;  %s1641_s8 = smov [#allocation2]  }
   0xa   :  { %v60_v26 = vand.u32 4294901760, %v1725_v21  ;;  %v63_v27 = vand.u32 4294901760, %v1730_v22  ;;  %v1752_v28 = vld [vmem:[%s2068_s1 + $0x50] sm:$0xff]  ;;  %v1757_v29 = vld [vmem:[%s2068_s1 + $0x58] sm:$0xff]  ;;  %v1766_v33 = vld [vmem:[%s2067_s0 + $0x8] sm:$0xff]  ;;  %v1799_v42 = vsub.f32 %v21_v2, %v42_v6  ;;  %v1801_v43 = vsub.f32 %v22_v5, %v45_v9  ;;  %s1020_s9 = sshll.u32 %s1641_s8, 4  ;;  %s1021_s9 = int_to_ptr.vmem [resolvable:$true] %s1020_s9 }
   0xb   :  { %1389 = vmatpush3.bf16.msra.mxu1 %v1688_v13  ;;  %1485 = vmatpush3.bf16.msra.mxu0 %v1688_v13  ;;  %v118_v24 = vand.u32 4294901760, %v1734_v23  ;;  %v66_v31 = vand.u32 4294901760, %v1752_v28  ;;  %2078 = vst [vmem:[#allocation5_spill] sm:$0xff] %v1766_v33  ;;  %v69_v35 = vand.u32 4294901760, %v1757_v29  ;;  %v1780_v36 = vld [vmem:[%s2068_s1 + $0x60] sm:$0xff]  ;;  %v1785_v37 = vld [vmem:[%s2068_s1 + $0x68] sm:$0xff]  ;;  %v1846_v57 = vsub.f32 %v1677_v7, %v48_v11  ;;  %p1621_p1 = scmp.lt.s32.totalorder %s1021_s9, %s1021_s9 }
   0xc   :  { %1391 = vmatprep.subr.bf16.mxu1 %v1718_v18  ;;  %1487 = vmatprep.subr.bf16.mxu0 %v1718_v18  ;;  %v1774_v34 = vpack.c.bf16 %v63_v27, %v60_v26  ;;  %v1794_v40 = vld [vmem:[%s2068_s1 + $0x70] sm:$0xff]  ;;  %v1797_v41 = vand.u32 4294901760, %v1766_v33  ;;  %v2074_v44 = vand.u32 4294901760, %v1780_v36  ;;  %v2073_v45 = vand.u32 4294901760, %v1785_v37  ;;  %v1810_v46 = vld [vmem:[%s2068_s1 + $0x78] sm:$0xff]  ;;  %s1616_s10 = scalar_lea.vmem %s1021_s9, 32 }
   0xd   :  { %v119_v30 = vsub.f32 %v1734_v23, %v118_v24  ;;  %1300 = vmatprep.mubr.f32.mxu0 %v118_v24  ;;  %v1818_v47 = vpack.c.bf16 %v69_v35, %v66_v31  ;;  %v159_v48 = vand.u32 4294901760, %v1787_v38  ;;  %v166_v49 = vand.u32 4294901760, %v1789_v39  ;;  %v1833_v55 = vld [vmem:[%s2067_s0 + $0x10] sm:$0xff]  ;;  %v1863_v62 = vld [vmem:[%s2067_s0 + $0x18] sm:$0xff]  ;;  %p1617_p0 = scmp.ne.s32.totalorder %s1021_s9, %s1616_s10  ;;  %p1622_p2 = scmp.lt.s32.totalorder %s1616_s10, %s1616_s10 }
   0xe   :  { %v2072_v50 = vand.u32 4294901760, %v1794_v40  ;;  %v2071_v51 = vand.u32 4294901760, %v1810_v46  ;;  %v1826_v52 = vsub.f32 %v1766_v33, %v1797_v41  ;;  %v173_v53 = vand.u32 4294901760, %v1799_v42  ;;  %2079 = vst [vmem:[#allocation6_spill] sm:$0xff] %v1833_v55  ;;  %2080 = vst [vmem:[#allocation7_spill] sm:$0xff] %v1863_v62 }
   0xf   :  { %1393 = vmatpush3.bf16.msra.mxu1 %v1718_v18  ;;  %1489 = vmatpush3.bf16.msra.mxu0 %v1718_v18  ;;  %v120_v32 = vand.u32 4294901760, %v119_v30  ;;  %v180_v54 = vand.u32 4294901760, %v1801_v43  ;;  %v1841_v56 = vpack.c.bf16 %v2073_v45, %v2074_v44  ;;  %v160_v58 = vsub.f32 %v1787_v38, %v159_v48  ;;  %p1623_p3 = por %p1622_p2, %p1621_p1 }
  0x10   :  { %1395 = vmatprep.subr.bf16.mxu1 %v1745_v25  ;;  %1491 = vmatprep.subr.bf16.mxu0 %v1745_v25  ;;  %v167_v59 = vsub.f32 %v1789_v39, %v166_v49  ;;  %v1855_v60 = vsub.f32 %v1682_v8, %v51_v12  ;;  %v1858_v61 = vand.u32 4294901760, %v1833_v55  ;;  %v1869_v63 = vpack.c.bf16 %v2071_v51, %v2072_v50 }
  0x11   :  { %1186 = vmatprep.mubr.f32.mxu1 %v120_v32  ;;  %v128_v0 = vand.u32 4294901760, %v1826_v52  ;;  %v174_v1 = vsub.f32 %v1799_v42, %v173_v53  ;;  %v181_v2 = vsub.f32 %v1801_v43, %v180_v54  ;;  %v187_v3 = vand.u32 4294901760, %v1846_v57  ;;  %p1624_p4 = pnand %p1623_p3, %p1617_p0 }
  0x12   :  { %v1880_v4 = vsub.f32 %v1693_v14, %v54_v19  ;;  %v1885_v5 = vsub.f32 %v1698_v15, %v57_v20  ;;  %v1889_v6 = vsub.f32 %v1833_v55, %v1858_v61  ;;  %v161_v7 = vand.u32 4294901760, %v160_v58 }
  0x13   :  { %1397 = vmatpush3.bf16.msra.mxu1 %v1745_v25  ;;  %1493 = vmatpush3.bf16.msra.mxu0 %v1745_v25  ;;  %v168_v8 = vand.u32 4294901760, %v167_v59  ;;  %v194_v9 = vand.u32 4294901760, %v1855_v60  ;;  %v1895_v11 = vand.u32 4294901760, %v1863_v62  ;;  %v1510_v12 = vpack.c.bf16 %v166_v49, %v159_v48 }
  0x14   :  { %1399 = vmatprep.subr.bf16.mxu1 %v1774_v34  ;;  %1495 = vmatprep.subr.bf16.mxu0 %v1774_v34  ;;  %v138_v14 = vand.u32 4294901760, %v1889_v6  ;;  %v129_v15 = vsub.f32 %v1826_v52, %v128_v0  ;;  %v175_v19 = vand.u32 4294901760, %v174_v1  ;;  %v1902_v20 = vsub.f32 %v1725_v21, %v60_v26 }
  0x15   :  { %v1906_v24 = vsub.f32 %v1863_v62, %v1895_v11  ;;  %v182_v30 = vand.u32 4294901760, %v181_v2  ;;  %v188_v32 = vsub.f32 %v1846_v57, %v187_v3  ;;  %v201_v48 = vand.u32 4294901760, %v1880_v4 }
  0x16   :  { %v208_v49 = vand.u32 4294901760, %v1885_v5  ;;  %v1414_v21 = vpack.c.bf16 %v168_v8, %v161_v7  ;;  %v195_v26 = vsub.f32 %v1855_v60, %v194_v9  ;;  %v1919_v58 = vsub.f32 %v1730_v22, %v63_v27 }
  0x17   :  { %1401 = vmatpush3.bf16.msra.mxu1 %v1774_v34  ;;  %1497 = vmatpush3.bf16.msra.mxu0 %v1774_v34  ;;  %v148_v59 = vand.u32 4294901760, %v1906_v24  ;;  %v1514_v1 = vpack.c.bf16 %v180_v54, %v173_v53  ;;  %v139_v2 = vsub.f32 %v1889_v6, %v138_v14  ;;  %v130_v51 = vand.u32 4294901760, %v129_v15 }
  0x18   :  { %1403 = vmatprep.subr.bf16.mxu1 %v1818_v47  ;;  %1499 = vmatprep.subr.bf16.mxu0 %v1818_v47  ;;  %v215_v50 = vand.u32 4294901760, %v1902_v20  ;;  %v1927_v45 = vsub.f32 %v1752_v28, %v66_v31  ;;  %v202_v22 = vsub.f32 %v1880_v4, %v201_v48  ;;  %v209_v27 = vsub.f32 %v1885_v5, %v208_v49 }
  0x19   :  { %v149_v7 = vsub.f32 %v1906_v24, %v148_v59  ;;  %v1937_v53 = vsub.f32 %v1757_v29, %v69_v35  ;;  %v1418_v54 = vpack.c.bf16 %v182_v30, %v175_v19  ;;  %v189_v28 = vand.u32 4294901760, %v188_v32 }
  0x1a   :  { %v196_v31 = vand.u32 4294901760, %v195_v26  ;;  %v222_v8 = vand.u32 4294901760, %v1919_v58  ;;  %v140_v15 = vand.u32 4294901760, %v139_v2  ;;  %v1518_v44 = vpack.c.bf16 %v194_v9, %v187_v3 }
  0x1b   :  { %1405 = vmatpush3.bf16.msra.mxu1 %v1818_v47  ;;  %1501 = vmatpush3.bf16.msra.mxu0 %v1818_v47  ;;  %v216_v62 = vsub.f32 %v1902_v20, %v215_v50  ;;  %v2081_v55 = vand.u32 4294901760, %v1780_v36  ;;  %v150_v29 = vand.u32 4294901760, %v149_v7  ;;  %v203_v35 = vand.u32 4294901760, %v202_v22 }
  0x1c   :  { %1407 = vmatprep.subr.bf16.mxu1 %v1841_v56  ;;  %1503 = vmatprep.subr.bf16.mxu0 %v1841_v56  ;;  %v210_v19 = vand.u32 4294901760, %v209_v27  ;;  %v229_v30 = vand.u32 4294901760, %v1927_v45  ;;  %v236_v32 = vand.u32 4294901760, %v1937_v53  ;;  %v2082_v3 = vand.u32 4294901760, %v1785_v37 }
  0x1d   :  { %v1944_v33 = vsub.f32 %v1780_v36, %v2081_v55  ;;  %v1522_v36 = vpack.c.bf16 %v208_v49, %v201_v48  ;;  %v217_v55 = vand.u32 4294901760, %v216_v62  ;;  %v2084_v48 = vand.u32 4294901760, %v1810_v46 }
  0x1e   :  { %v1952_v9 = vsub.f32 %v1785_v37, %v2082_v3  ;;  %v237_v26 = vsub.f32 %v1937_v53, %v236_v32  ;;  %v1446_v3 = vpack.c.bf16 %v1789_v39, %v1787_v38  ;;  %v1454_v38 = vpack.c.bf16 %v1855_v60, %v1846_v57 }
  0x1f   :  { %1409 = vmatpush3.bf16.msra.mxu1 %v1841_v56  ;;  %1505 = vmatpush3.bf16.msra.mxu0 %v1841_v56  ;;  %v243_v2 = vand.u32 4294901760, %v1944_v33  ;;  %v1966_v49 = vsub.f32 %v1810_v46, %v2084_v48  ;;  %v1462_v39 = vpack.c.bf16 %v1919_v58, %v1902_v20  ;;  %vm805_vm0 = vcmask 7168  }
  0x20   :  { %1411 = vmatprep.subr.bf16.mxu1 %v1869_v63  ;;  %1507 = vmatprep.subr.bf16.mxu0 %v1869_v63  ;;  %v250_v37 = vand.u32 4294901760, %v1952_v9  ;;  %v238_v22 = vand.u32 4294901760, %v237_v26  ;;  %vm920_vm1 = vcmask 1041409   ;;  %vm923_vm2 = vcmask 1041408  }
  0x21   :  { %v244_v27 = vsub.f32 %v1944_v33, %v243_v2  ;;  %v264_v46 = vand.u32 4294901760, %v1966_v49 }
  0x23   :  { %1413 = vmatpush3.bf16.msra.mxu1 %v1869_v63  ;;  %1509 = vmatpush3.bf16.msra.mxu0 %v1869_v63 }
  0x24   :  { %1415 = vmatprep.subr.bf16.mxu1 %v1414_v21  ;;  %1511 = vmatprep.subr.bf16.mxu0 %v1510_v12 }
  0x26   :  { %1187 = vmatmul.mubr.f32.vlgmr.msra.gmra.mrb[0].mxu1 %v130_v51  ;;  %1301 = vmatmul.mubr.f32.vlgmr.msra.gmra.mrb[0].mxu0 %v128_v0  ;;  %v1422_v51 = vpack.c.bf16 %v196_v31, %v189_v28  ;;  %v223_v0 = vsub.f32 %v1919_v58, %v222_v8 }
  0x27   :  { %1417 = vmatpush3.bf16.msra.mxu1 %v1414_v21  ;;  %1513 = vmatpush3.bf16.msra.mxu0 %v1510_v12  ;;  %v1426_v12 = vpack.c.bf16 %v210_v19, %v203_v35  ;;  %v230_v21 = vsub.f32 %v1927_v45, %v229_v30  ;;  %v1534_v19 = vpack.c.bf16 %v250_v37, %v243_v2 }
  0x28   :  { %1419 = vmatprep.subr.bf16.mxu1 %v1418_v54  ;;  %1515 = vmatprep.subr.bf16.mxu0 %v1514_v1  ;;  %v224_v7 = vand.u32 4294901760, %v223_v0 }
  0x29   :  { %1189 = vmatprep.mubr.f32.mxu1 %v140_v15  ;;  %1303 = vmatprep.mubr.f32.mxu0 %v138_v14  ;;  %v2083_v14 = vand.u32 4294901760, %v1794_v40  ;;  %v1530_v15 = vpack.c.bf16 %v236_v32, %v229_v30 }
  0x2a   :  { %1190 = vmatmul.mubr.f32.gmra.mrb[2].mxu1 %v150_v29  ;;  %1304 = vmatmul.mubr.f32.gmra.mrb[2].mxu0 %v148_v59  ;;  %v1526_v59 = vpack.c.bf16 %v222_v8, %v215_v50  ;;  %v265_v29 = vsub.f32 %v1966_v49, %v264_v46 }
  0x2b   :  { %1421 = vmatpush3.bf16.msra.mxu1 %v1418_v54  ;;  %1517 = vmatpush3.bf16.msra.mxu0 %v1514_v1  ;;  %v1961_v62 = vsub.f32 %v1794_v40, %v2083_v14  ;;  %v231_v1 = vand.u32 4294901760, %v230_v21  ;;  %v1430_v40 = vpack.c.bf16 %v224_v7, %v217_v55  ;;  %v251_v54 = vsub.f32 %v1952_v9, %v250_v37 }
  0x2c   :  { %1423 = vmatprep.subr.bf16.mxu1 %v1422_v51  ;;  %1519 = vmatprep.subr.bf16.mxu0 %v1518_v44  ;;  %v266_v0 = vand.u32 4294901760, %v265_v29 }
  0x2d   :  { %1224 = vmatprep.mubr.f32.mxu1 %v1710_v17  ;;  %1338 = vmatprep.mubr.f32.mxu0 %v1710_v17  ;;  %v257_v28 = vand.u32 4294901760, %v1961_v62  ;;  %v1434_v31 = vpack.c.bf16 %v238_v22, %v231_v1  ;;  %v252_v50 = vand.u32 4294901760, %v251_v54 }
  0x2f   :  { %1425 = vmatpush3.bf16.msra.mxu1 %v1422_v51  ;;  %1521 = vmatpush3.bf16.msra.mxu0 %v1518_v44  ;;  %v245_v44 = vand.u32 4294901760, %v244_v27  ;;  %v258_v8 = vsub.f32 %v1961_v62, %v257_v28  ;;  %v1538_v32 = vpack.c.bf16 %v264_v46, %v257_v28 }
  0x30   :  { %1427 = vmatprep.subr.bf16.mxu1 %v1426_v12  ;;  %1523 = vmatprep.subr.bf16.mxu0 %v1522_v36 }
  0x31   :  { %v1438_v35 = vpack.c.bf16 %v252_v50, %v245_v44  ;;  %v259_v51 = vand.u32 4294901760, %v258_v8 }
  0x33   :  { %1429 = vmatpush3.bf16.msra.mxu1 %v1426_v12  ;;  %1525 = vmatpush3.bf16.msra.mxu0 %v1522_v36  ;;  %v1442_v30 = vpack.c.bf16 %v266_v0, %v259_v51  ;;  %v1450_v36 = vpack.c.bf16 %v1801_v43, %v1799_v42 }
  0x34   :  { %1431 = vmatprep.subr.bf16.mxu1 %v1430_v40  ;;  %1527 = vmatprep.subr.bf16.mxu0 %v1526_v59 }
  0x37   :  { %1433 = vmatpush3.bf16.msra.mxu1 %v1430_v40  ;;  %1529 = vmatpush3.bf16.msra.mxu0 %v1526_v59 }
  0x38   :  { %1435 = vmatprep.subr.bf16.mxu1 %v1434_v31  ;;  %1531 = vmatprep.subr.bf16.mxu0 %v1530_v15 }
  0x3b   :  { %1437 = vmatpush3.bf16.msra.mxu1 %v1434_v31  ;;  %1533 = vmatpush3.bf16.msra.mxu0 %v1530_v15 }
  0x3c   :  { %1439 = vmatprep.subr.bf16.mxu1 %v1438_v35  ;;  %1535 = vmatprep.subr.bf16.mxu0 %v1534_v19 }
  0x3f   :  { %1441 = vmatpush3.bf16.msra.mxu1 %v1438_v35  ;;  %1537 = vmatpush3.bf16.msra.mxu0 %v1534_v19 }
  0x40   :  { %1443 = vmatprep.subr.bf16.mxu1 %v1442_v30  ;;  %1539 = vmatprep.subr.bf16.mxu0 %v1538_v32 }
  0x43   :  { %1445 = vmatpush3.bf16.msra.mxu1 %v1442_v30  ;;  %1541 = vmatpush3.bf16.msra.mxu0 %v1538_v32 }
  0x44   :  { %1447 = vmatprep.subr.bf16.mxu1 %v1446_v3  ;;  %1543 = vmatprep.subr.bf16.mxu0 %v1684_v10 }
  0x46   :  { %1225 = vmatmul.mubr.f32.vlgmr.msra.gmra.mrb[0].mxu1 %v1797_v41  ;;  %1339 = vmatmul.mubr.f32.vlgmr.msra.gmra.mrb[0].mxu0 %v1797_v41 }
  0x47   :  { %1449 = vmatpush3.bf16.msra.mxu1 %v1446_v3  ;;  %1545 = vmatpush3.bf16.msra.mxu0 %v1684_v10  ;;  %v1458_v10 = vpack.c.bf16 %v1885_v5, %v1880_v4 }
  0x48   :  { %1451 = vmatprep.subr.bf16.mxu1 %v1450_v36  ;;  %1547 = vmatprep.subr.bf16.mxu0 %v1688_v13 }
  0x49   :  { %1227 = vmatprep.mubr.f32.mxu1 %v1858_v61  ;;  %1341 = vmatprep.mubr.f32.mxu0 %v1858_v61 }
  0x4a   :  { %1228 = vmatmul.mubr.f32.gmra.mrb[2].mxu1 %v1895_v11  ;;  %1342 = vmatmul.mubr.f32.gmra.mrb[2].mxu0 %v1895_v11 }
  0x4b   :  { %1453 = vmatpush3.bf16.msra.mxu1 %v1450_v36  ;;  %1549 = vmatpush3.bf16.msra.mxu0 %v1688_v13  ;;  %v1466_v13 = vpack.c.bf16 %v1937_v53, %v1927_v45 }
  0x4c   :  { %1455 = vmatprep.subr.bf16.mxu1 %v1454_v38  ;;  %1551 = vmatprep.subr.bf16.mxu0 %v1718_v18 }
  0x4d   :  { %1262 = vmatprep.mubr.f32.mxu1 %v1734_v23  ;;  %1376 = vmatprep.mubr.f32.mxu0 %v1710_v17  ;;  %v1470_v17 = vpack.c.bf16 %v1952_v9, %v1944_v33  ;;  %v1640_v23 = vmov 0  }
  0x4e   :  { %1596 = vset.pattern.permute.xlu0 %v1640_v23  ;;  %1597 = vset.pattern.permute.xlu1 %v1640_v23 }
  0x4f   :  { %1457 = vmatpush3.bf16.msra.mxu1 %v1454_v38  ;;  %1553 = vmatpush3.bf16.msra.mxu0 %v1718_v18  ;;  %v1474_v18 = vpack.c.bf16 %v1966_v49, %v1961_v62 }
  0x50   :  { %1459 = vmatprep.subr.bf16.mxu1 %v1458_v10  ;;  %1555 = vmatprep.subr.bf16.mxu0 %v1745_v25 }
  0x53   :  { %1461 = vmatpush3.bf16.msra.mxu1 %v1458_v10  ;;  %1557 = vmatpush3.bf16.msra.mxu0 %v1745_v25 }
  0x54   :  { %1463 = vmatprep.subr.bf16.mxu1 %v1462_v39  ;;  %1559 = vmatprep.subr.bf16.mxu0 %v1774_v34 }
  0x57   :  { %1465 = vmatpush3.bf16.msra.mxu1 %v1462_v39  ;;  %1561 = vmatpush3.bf16.msra.mxu0 %v1774_v34 }
  0x58   :  { %1467 = vmatprep.subr.bf16.mxu1 %v1466_v13  ;;  %1563 = vmatprep.subr.bf16.mxu0 %v1818_v47 }
  0x5b   :  { %1469 = vmatpush3.bf16.msra.mxu1 %v1466_v13  ;;  %1565 = vmatpush3.bf16.msra.mxu0 %v1818_v47 }
  0x5c   :  { %1471 = vmatprep.subr.bf16.mxu1 %v1470_v17  ;;  %1567 = vmatprep.subr.bf16.mxu0 %v1841_v56 }
  0x5f   :  { %1473 = vmatpush3.bf16.msra.mxu1 %v1470_v17  ;;  %1569 = vmatpush3.bf16.msra.mxu0 %v1841_v56 }
  0x60   :  { %1475 = vmatprep.subr.bf16.mxu1 %v1474_v18  ;;  %1571 = vmatprep.subr.bf16.mxu0 %v1869_v63 }
  0x63   :  { %1477 = vmatpush3.bf16.msra.mxu1 %v1474_v18  ;;  %1573 = vmatpush3.bf16.msra.mxu0 %v1869_v63 }
  0x66   :  { %1263 = vmatmul.mubr.f32.vlgmr.msra.gmra.mrb[0].mxu1 %v1826_v52  ;;  %1377 = vmatmul.mubr.f32.vlgmr.msra.gmra.mrb[0].mxu0 %v1797_v41 }
  0x67   :  { %1265 = vmatprep.mubr.f32.mxu1 %v1889_v6  ;;  %1379 = vmatprep.mubr.f32.mxu0 %v1858_v61 }
  0x6a   :  { %1266 = vmatmul.mubr.f32.gmra.mrb[2].mxu1 %v1906_v24  ;;  %1380 = vmatmul.mubr.f32.gmra.mrb[2].mxu0 %v1895_v11 }
 0x139   :  { %v1264_v25 = vpop.f32.mrb[0].mxu1  ;;  %v1378_v33 = vpop.f32.mrb[0].mxu0 }
 0x13a   :  { %v1574_v34 = vadd.f32 %v1378_v33, %v1264_v25  ;;  %v425_v42 = vpop.f32.mrb[1].mxu1  ;;  %v783_v43 = vpop.f32.mrb[1].mxu0 }
 0x13b   :  { %v1575_v45 = vadd.f32 %v783_v43, %v425_v42  ;;  %v2085_v42 = vld [vmem:[#allocation5_spill] sm:$0xff] }
 0x13c   :  { %v807_v41 = vsel %vm805_vm0, %v1574_v34, -inf }
 0x13d   :  { %v806_v47 = vsel %vm805_vm0, %v1575_v45, -inf  ;;  %v1267_v52 = vpop.f32.mrb[2].mxu1  ;;  %v1381_v56 = vpop.f32.mrb[2].mxu0 }
 0x13e   :  { %v808_v57 = vmax.f32 %v806_v47, %v807_v41  ;;  %v1576_v60 = vadd.f32 %v1381_v56, %v1267_v52  ;;  %v439_v61 = vpop.f32.mrb[3].mxu1  ;;  %v795_v63 = vpop.f32.mrb[3].mxu0  ;;  %v2086_v52 = vld [vmem:[#allocation6_spill] sm:$0xff] }
 0x13f   :  { %v1577_v4 = vadd.f32 %v795_v63, %v439_v61 }
 0x140   :  { %v809_v5 = vrot.slane %v808_v57, 4  ;;  %v816_v6 = vsel %vm805_vm0, %v1576_v60, -inf }
 0x141   :  { %v815_v11 = vsel %vm805_vm0, %v1577_v4, -inf }
 0x142   :  { %v810_v20 = vmax.f32 %v808_v57, %v809_v5  ;;  %v817_v24 = vmax.f32 %v815_v11, %v816_v6  ;;  %v2087_v57 = vld [vmem:[#allocation7_spill] sm:$0xff] }
 0x144   :  { %v811_v58 = vrot.slane %v810_v20, 2  ;;  %v818_v53 = vrot.slane %v817_v24, 4 }
 0x146   :  { %v812_v9 = vmax.f32 %v810_v20, %v811_v58  ;;  %v819_v55 = vmax.f32 %v817_v24, %v818_v53 }
 0x148   :  { %v813_v12 = vrot.slane %v812_v9, 1  ;;  %v820_v21 = vrot.slane %v819_v55, 2 }
 0x14a   :  { %v814_v26 = vmax.f32 %v812_v9, %v813_v12  ;;  %v821_v2 = vmax.f32 %v819_v55, %v820_v21 }
 0x14c   :  { %v824_v7 = vsub.f32 %v1575_v45, %v814_v26  ;;  %v825_v37 = vsub.f32 %v1574_v34, %v814_v26  ;;  %v822_v14 = vrot.slane %v821_v2, 1 }
 0x14e   :  { %v828_v62 = vmul.f32 1.442695, %v824_v7  ;;  %v830_v48 = vmul.f32 1.442695, %v825_v37  ;;  %v823_v49 = vmax.f32 %v821_v2, %v822_v14 }
 0x150   :  { %1598 = vpow2.f32 %v828_v62  ;;  %v826_v59 = vsub.f32 %v1577_v4, %v823_v49  ;;  %v827_v1 = vsub.f32 %v1576_v60, %v823_v49 }
 0x151   :  { %1600 = vpow2.f32 %v830_v48 }
 0x152   :  { %v832_v22 = vmul.f32 1.442695, %v826_v59  ;;  %v834_v27 = vmul.f32 1.442695, %v827_v1 }
 0x154   :  { %1602 = vpow2.f32 %v832_v22 }
 0x155   :  { %1604 = vpow2.f32 %v834_v27 }
 0x15a   :  { %v1599_v40 = vpop.eup %1598 }
 0x15b   :  { %v1601_v54 = vpop.eup %1600  ;;  %v836_v28 = vsel %vm805_vm0, %v1599_v40, 0.0  ;;  %860 = vperm.xlu0 %1596, %v1599_v40  }
 0x15c   :  { %v837_v46 = vsel %vm805_vm0, %v1601_v54, 0.0 }
 0x15d   :  { %v838_v31 = vadd.f32 %v837_v46, %v836_v28 }
 0x15e   :  { %v1603_v15 = vpop.eup %1602 }
 0x15f   :  { %v1605_v44 = vpop.eup %1604  ;;  %v839_v50 = vrot.slane %v838_v31, 4  ;;  %v845_v8 = vsel %vm805_vm0, %v1603_v15, 0.0  ;;  %865 = vperm.xlu0 %1596, %v1601_v54   ;;  %870 = vperm.xlu1 %1597, %v1603_v15  }
 0x160   :  { %v846_v29 = vsel %vm805_vm0, %v1605_v44, 0.0 }
 0x161   :  { %v840_v35 = vadd.f32 %v839_v50, %v838_v31  ;;  %v847_v19 = vadd.f32 %v846_v29, %v845_v8 }
 0x163   :  { %v841_v51 = vrot.slane %v840_v35, 2  ;;  %v848_v0 = vrot.slane %v847_v19, 4  ;;  %875 = vperm.xlu1 %1597, %v1605_v44  }
 0x165   :  { %v842_v30 = vadd.f32 %v841_v51, %v840_v35  ;;  %v849_v32 = vadd.f32 %v848_v0, %v847_v19  ;;  %v1028_v19 = vld [vmem:[%s2069_s2 + $0x4] ss:$0 sm:$0xff]  ;;  %v1030_v0 = vld [vmem:[%s2069_s2 + $0x5] ss:$0 sm:$0xff] }
 0x167   :  { %v843_v3 = vrot.slane %v842_v30, 1  ;;  %v850_v36 = vrot.slane %v849_v32, 2 }
 0x169   :  { %v844_v38 = vadd.f32 %v843_v3, %v842_v30  ;;  %v851_v10 = vadd.f32 %v850_v36, %v849_v32  ;;  %v1031_v36 = vld [vmem:[%s2069_s2 + $0x3] ss:$0 sm:$0xff] }
 0x16b   :  { %1606 = vrcp.f32 %v844_v38  ;;  %v852_v39 = vrot.slane %v851_v10, 1 }
 0x16d   :  { %v853_v13 = vadd.f32 %v852_v39, %v851_v10 }
 0x16f   :  { %1608 = vrcp.f32 %v853_v13  ;;  %v1029_v13 = vld [vmem:[%s2069_s2 + $0x2] ss:$0 sm:$0xff] }
 0x175   :  { %v1607_v17 = vpop.eup %1606 }
 0x176   :  { %898 = vperm.xlu0 %1596, %v1607_v17  }
 0x179   :  { %v1609_v18 = vpop.eup %1608 }
 0x17a   :  { %903 = vperm.xlu1 %1597, %v1609_v18  }
 0x1da   :  { %v861_v23 = vpop.permute.xlu0 %860 }
 0x1db   :  { %v878_v34 = vmul.f32 %v861_v23, %v1705_v16 }
 0x1de   :  { %v866_v25 = vpop.permute.xlu0 %865  ;;  %v871_v33 = vpop.permute.xlu1 %870 }
 0x1df   :  { %v879_v43 = vmul.f32 %v866_v25, %v2085_v42  ;;  %v880_v56 = vmul.f32 %v871_v33, %v2086_v52 }
 0x1e1   :  { %v882_v45 = vadd.f32 %v879_v43, %v878_v34 }
 0x1e2   :  { %v876_v41 = vpop.permute.xlu1 %875 }
 0x1e3   :  { %v883_v47 = vrot.slane %v882_v45, 4  ;;  %v881_v60 = vmul.f32 %v876_v41, %v2087_v57 }
 0x1e5   :  { %v884_v61 = vadd.f32 %v883_v47, %v882_v45  ;;  %v889_v63 = vadd.f32 %v881_v60, %v880_v56  ;;  %v1032_v45 = vld [vmem:[%s2069_s2] ss:$0 sm:$0xff]  ;;  %v1033_v56 = vld [vmem:[%s2069_s2 + $0x1] ss:$0 sm:$0xff] }
 0x1e7   :  { %v890_v4 = vrot.slane %v889_v63, 4  ;;  %v885_v5 = vrot.slane %v884_v61, 2 }
 0x1e9   :  { %v891_v6 = vadd.f32 %v890_v4, %v889_v63  ;;  %v886_v11 = vadd.f32 %v885_v5, %v884_v61 }
 0x1eb   :  { %v892_v20 = vrot.slane %v891_v6, 2  ;;  %v887_v24 = vrot.slane %v886_v11, 1 }
 0x1ed   :  { %v893_v58 = vadd.f32 %v892_v20, %v891_v6  ;;  %v888_v53 = vadd.f32 %v887_v24, %v886_v11 }
 0x1ef   :  { %v894_v16 = vrot.slane %v893_v58, 1 }
 0x1f1   :  { %v895_v21 = vadd.f32 %v894_v16, %v893_v58 }
 0x1f5   :  { %v899_v9 = vpop.permute.xlu0 %898 }
 0x1f6   :  { %v906_v55 = vmul.f32 %v899_v9, %v888_v53 }
 0x1f8   :  { %v910_v12 = vmul.f32 0.70710677, %v906_v55  ;;  %v908_v48 = vmul.f32 0.5, %v906_v55 }
 0x1f9   :  { %v904_v26 = vpop.permute.xlu1 %903 }
 0x1fa   :  { %1610 = verf.f32 %v910_v12  ;;  %v907_v2 = vmul.f32 %v904_v26, %v895_v21 }
 0x1fc   :  { %v911_v7 = vmul.f32 0.70710677, %v907_v2  ;;  %v909_v49 = vmul.f32 0.5, %v907_v2 }
 0x1fe   :  { %1612 = verf.f32 %v911_v7 }
 0x204   :  { %v1611_v37 = vpop.eup %1610 }
 0x205   :  { %v914_v14 = vadd.f32 1.0, %v1611_v37 }
 0x207   :  { %v916_v1 = vmul.f32 %v914_v14, %v908_v48 }
 0x208   :  { %v1613_v62 = vpop.eup %1612 }
 0x209   :  { %v915_v59 = vadd.f32 1.0, %v1613_v62 }
 0x20b   :  { %v917_v22 = vmul.f32 %v915_v59, %v909_v49 }
 0x20d   :  { %v921_v27 = vsel %vm920_vm1, %v917_v22, %v916_v1 }
 0x20e   :  { %v924_v40 = vsel %vm923_vm2, %v921_v27, 0.0 }
 0x20f   :  { %925 = vadd.xlane.f32.xlu0 %v924_v40 }
 0x29c   :  { %v926_v54 = vpop.xlane.xlu0 %925 }
 0x29d   :  { %v928_v28 = vmul.f32 0.0078125, %v926_v54 }
 0x29f   :  { %v930_v46 = vrot.slane %v928_v28, 1  ;;  %v933_v31 = vsub.f32 %v916_v1, %v928_v28  ;;  %v951_v51 = vmul.f32 %v1028_v19, %v928_v28 }
 0x2a1   :  { %v934_v15 = vsub.f32 %v917_v22, %v930_v46  ;;  %v935_v50 = vmul.f32 %v933_v31, %v933_v31 }
 0x2a3   :  { %v936_v44 = vmul.f32 %v934_v15, %v934_v15 }
 0x2a5   :  { %v939_v8 = vrot.slane %v936_v44, 7 }
 0x2a7   :  { %v940_v29 = vsel %vm920_vm1, %v939_v8, %v935_v50 }
 0x2a8   :  { %v942_v35 = vsel %vm923_vm2, %v940_v29, 0.0 }
 0x2a9   :  { %943 = vadd.xlane.f32.xlu1 %v942_v35 }
 0x2ba   :  { %955 = vperm.xlu1 %1597, %v951_v51  }
 0x336   :  { %v944_v30 = vpop.xlane.xlu1 %943 }
 0x337   :  { %v945_v32 = vmul.f32 0.007874016, %v944_v30 }
 0x339   :  { %v968_v3 = vmul.f32 %v1030_v0, %v945_v32 }
 0x33a   :  { %v956_v17 = vpop.permute.xlu1 %955 }
 0x33b   :  { %972 = vperm.xlu0 %1596, %v968_v3   ;;  %v962_v18 = vadd.f32 %v1029_v13, %v956_v17 }
 0x33d   :  { %v981_v23 = vrot.slane %v962_v18, 1  ;;  %v984_v25 = vsub.f32 %v916_v1, %v962_v18 }
 0x33f   :  { %v985_v34 = vsub.f32 %v917_v22, %v981_v23 }
 0x3ba   :  { %v973_v38 = vpop.permute.xlu0 %972 }
 0x3bb   :  { %v979_v10 = vadd.f32 %v1031_v36, %v973_v38 }
 0x3bd   :  { %v986_v39 = vadd.f32 0.001, %v979_v10 }
 0x3bf   :  { %1614 = vrsqrt.f32 %v986_v39 }
 0x3c9   :  { %v1615_v33 = vpop.eup %1614 }
 0x3ca   :  { %v989_v42 = vrot.slane %v1615_v33, 1  ;;  %v992_v43 = vmul.f32 %v1615_v33, %v984_v25 }
 0x3cc   :  { %v993_v41 = vmul.f32 %v989_v42, %v985_v34  ;;  %v999_v47 = vmul.f32 %v1032_v45, %v992_v43 }
 0x3ce   :  { %v1000_v52 = vmul.f32 %v1032_v45, %v993_v41  ;;  %v1006_v60 = vadd.f32 %v1033_v56, %v999_v47 }
 0x3d0   :  { %v1007_v57 = vadd.f32 %v1033_v56, %v1000_v52 }
 0x3d2   :  { %v1010_v61 = vrot.slane %v1007_v57, 7 }
 0x3d4   :  { %v1011_v63 = vsel %vm920_vm1, %v1010_v61, %v1006_v60 }
 0x3d5   :  { %1013 = vst [vmem:[#allocation2] sm:$0x3] %v1011_v63 }
 0x3d6   :  { %1627 = shalt.err (!%p1624_p4)
}
 0x3d7   :  { %s1628_s2 = scalar_lea.hbm %s2070_s3, 32 }
 0x3d8   :  { %p1629_p5 = scmp.ne.s32.totalorder %s2070_s3, %s1628_s2  ;;  %p1632_p6 = scmp.lt.u32.totalorder %s1628_s2, %s2070_s3 }
 0x3da   :  { %p1634_p7 = pnand %p1632_p6, %p1629_p5 }
 0x3dc   :  { %1637 = shalt.err (!%p1634_p7)
}
 0x3dd   :  { %1023 = dma.vmem_to_hbm [thread:$0]  %s1021_s9, 32, %s2070_s3, [#allocation3]  }
 0x3de   :  { %1638 = dma.done.wait [#allocation3], 32  }
 0x3df   :  { %1639 = vsyncadd [#allocation3], 4294967264 }
 0x3e0   :  { %1027 = vsyncpa [#allocation3], 1 }

</bundles_post_ra>
